<compile_context>
chip_gen: v7x
topology: tpu7x:2x2x1
jax: 0.10.0
libtpu: 0.0.40
codegen_flags: <defaults>
</compile_context>

<pallas_src>
import jax
import jax.numpy as jnp
from jax.experimental import pallas as pl
from jax.experimental.pallas import tpu as pltpu

PACK = 16  # batch rows folded into the lane dim -> output lanes = 16*40 = 640


def multilinear_kernel(x_ref, w_ref, b_ref, o_ref):
    # Single affine map on lane-dense packed blocks: (tb,160) @ (160,640) + (1,640).
    o_ref[...] = (
        jnp.dot(x_ref[...], w_ref[...], preferred_element_type=jnp.float32)
        + b_ref[...]
    ).astype(o_ref.dtype)


def multilinear(x, params, *, block_rows=2048):
    """Fused forward of Linear(10,20) -> Linear(20,30) -> Linear(30,40).

    x: (B, 10); params: ((w1,b1),(w2,b2),(w3,b3)) in PyTorch (out, in) layout.
    """
    (w1, b1), (w2, b2), (w3, b3) = params
    f32 = jnp.float32

    # Collapse the affine chain once, in f32 (tiny, done by XLA outside the kernel):
    #   y = ((x W1^T + b1) W2^T + b2) W3^T + b3
    #     = x (W3 W2 W1)^T + (W3 (W2 b1 + b2) + b3)
    w_c = w3.astype(f32) @ w2.astype(f32) @ w1.astype(f32)                     # (40, 10)
    b_c = (w3.astype(f32) @ (w2.astype(f32) @ b1.astype(f32) + b2.astype(f32))
           + b3.astype(f32))                                                   # (40,)
    w_ct = w_c.T                                                               # (10, 40)

    B, in_features = x.shape
    out_features = w_c.shape[0]

    # Lane-dense packing: fold PACK batch rows into the lane dimension.
    b_pad = pl.cdiv(B, PACK) * PACK
    if b_pad != B:
        x = jnp.pad(x, ((0, b_pad - B), (0, 0)))
    rows = b_pad // PACK
    in_pk = PACK * in_features            # 160
    out_pk = PACK * out_features          # 640

    x_pk = x.reshape(rows, in_pk)                                              # row-major view
    w_bd = jnp.kron(jnp.eye(PACK, dtype=f32), w_ct).astype(x.dtype)            # (160, 640)
    b_bd = jnp.tile(b_c, PACK).reshape(1, out_pk).astype(x.dtype)              # (1, 640)

    # Batch tile over packed rows: full array when small, else a multiple of 8.
    tb = min(block_rows, rows)
    if tb < rows:
        tb = max(8, (tb // 8) * 8)
    grid = (pl.cdiv(rows, tb),)

    out_packed = pl.pallas_call(
        multilinear_kernel,
        out_shape=jax.ShapeDtypeStruct((rows, out_pk), x.dtype),
        grid_spec=pltpu.PrefetchScalarGridSpec(
            num_scalar_prefetch=0,
            grid=grid,
            in_specs=[
                pl.BlockSpec((tb, in_pk), lambda i: (i, 0)),      # x streams
                pl.BlockSpec((in_pk, out_pk), lambda i: (0, 0)),  # block-diag W resident
                pl.BlockSpec((1, out_pk), lambda i: (0, 0)),      # bias resident
            ],
            out_specs=pl.BlockSpec((tb, out_pk), lambda i: (i, 0)),
        ),
        compiler_params=pltpu.CompilerParams(
            dimension_semantics=("parallel",),    # shards batch over v7x's 2 TCs
            vmem_limit_bytes=32 * 1024 * 1024,    # room for large double-buffered tiles
        ),
    )(x_pk, w_bd, b_bd)

    # Unpack lanes back to (B, 40); drop zero-padding rows.
    return out_packed.reshape(b_pad, out_features)[:B]


def init_linear_params(key, in_features, out_features, dtype=jnp.float32):
    # Deterministic init mimicking torch.nn.Linear's uniform(-1/sqrt(in), 1/sqrt(in)).
    kw, kb = jax.random.split(key)
    bound = 1.0 / jnp.sqrt(jnp.asarray(in_features, dtype))
    w = jax.random.uniform(kw, (out_features, in_features), dtype, -bound, bound)
    b = jax.random.uniform(kb, (out_features,), dtype, -bound, bound)
    return w, b


def reference(x, params):
    # Exact PyTorch-semantics chain (no algebraic collapse) for verification.
    (w1, b1), (w2, b2), (w3, b3) = params
    h = x @ w1.T + b1
    h = h @ w2.T + b2
    return h @ w3.T + b3


if __name__ == "__main__":
    key = jax.random.PRNGKey(0)
    k_x, k1, k2, k3 = jax.random.split(key, 4)

    B = 8
    x = jax.random.normal(k_x, (B, 10), dtype=jnp.float32)
    params = (
        init_linear_params(k1, 10, 20),
        init_linear_params(k2, 20, 30),
        init_linear_params(k3, 30, 40),
    )

    out = multilinear(x, params)
    out = jax.block_until_ready(out)

    ref = reference(x, params)
    assert out.shape == (B, 40), out.shape
    # Collapsed affine map differs from the chained reference only by f32 rounding.
    assert jnp.allclose(out, ref, atol=2e-5, rtol=2e-5), "mismatch vs reference"

    print("KERNEL_OK")
</pallas_src>

<mosaic_0001>
module attributes {stable_mosaic.version = 11 : i64} {
  func.func @multilinear_kernel(%arg0: i32, %arg1: memref<1x160xf32, #tpu.memory_space<vmem>>, %arg2: memref<160x640xf32, #tpu.memory_space<vmem>>, %arg3: memref<1x640xf32, #tpu.memory_space<vmem>>, %arg4: memref<1x640xf32, #tpu.memory_space<vmem>>) attributes {dimension_semantics = [#tpu.dimension_semantics<parallel>], iteration_bounds = array<i64: 1>, scalar_prefetch = 0 : i64, scratch_operands = 0 : i64, tpu.core_type = #tpu.core_type<tc>, window_params = [{transform_indices = @transform_0, window_bounds = array<i64: 1, 160>}, {pipeline_mode = #tpu.pipeline_mode<synchronous>, transform_indices = @transform_1, window_bounds = array<i64: 160, 640>}, {pipeline_mode = #tpu.pipeline_mode<synchronous>, transform_indices = @transform_2, window_bounds = array<i64: 1, 640>}, {transform_indices = @transform_3, window_bounds = array<i64: 1, 640>}]} {
    %c0 = arith.constant 0 : index
    %c0_0 = arith.constant 0 : index
    %0 = vector.load %arg1[%c0, %c0_0] : memref<1x160xf32, #tpu.memory_space<vmem>>, vector<1x160xf32>
    %c0_1 = arith.constant 0 : index
    %c0_2 = arith.constant 0 : index
    %1 = vector.load %arg2[%c0_1, %c0_2] : memref<160x640xf32, #tpu.memory_space<vmem>>, vector<160x640xf32>
    %cst = arith.constant dense<0.000000e+00> : vector<1x640xf32>
    %2 = tpu.matmul %0, %1, %cst {dimension_numbers = #tpu.dot_dimension_numbers<[1], [0], [0], [1], [0, 0, 1, 1], [], []>} : vector<1x160xf32>, vector<160x640xf32>, vector<1x640xf32> -> vector<1x640xf32>
    %c0_3 = arith.constant 0 : index
    %c0_4 = arith.constant 0 : index
    %3 = vector.load %arg3[%c0_3, %c0_4] : memref<1x640xf32, #tpu.memory_space<vmem>>, vector<1x640xf32>
    %4 = arith.addf %2, %3 : vector<1x640xf32>
    %c0_5 = arith.constant 0 : index
    %c0_6 = arith.constant 0 : index
    %5 = vector.load %arg4[%c0_5, %c0_6] : memref<1x640xf32, #tpu.memory_space<vmem>>, vector<1x640xf32>
    tpu.vector_store %arg4[%c0_5, %c0_6], %4 {strides = array<i32>} : memref<1x640xf32, #tpu.memory_space<vmem>>, vector<1x640xf32>,
    return
  }
  func.func @transform_0(%arg0: i32) -> (i32, i32) {
    %c0_i32 = arith.constant 0 : i32
    %c0_i32_0 = arith.constant 0 : i32
    return %arg0, %c0_i32 : i32, i32
  }
  func.func @transform_1(%arg0: i32) -> (i32, i32) {
    %c0_i32 = arith.constant 0 : i32
    %c0_i32_0 = arith.constant 0 : i32
    %c0_i32_1 = arith.constant 0 : i32
    return %c0_i32, %c0_i32_0 : i32, i32
  }
  func.func @transform_2(%arg0: i32) -> (i32, i32) {
    %c0_i32 = arith.constant 0 : i32
    %c0_i32_0 = arith.constant 0 : i32
    %c0_i32_1 = arith.constant 0 : i32
    return %c0_i32, %c0_i32_0 : i32, i32
  }
  func.func @transform_3(%arg0: i32) -> (i32, i32) {
    %c0_i32 = arith.constant 0 : i32
    %c0_i32_0 = arith.constant 0 : i32
    return %arg0, %c0_i32 : i32, i32
  }
}

</mosaic_0001>

<bundles_post_ra>
// kernel: tpu_custom_call.1
= control target key start
LH: loop header
LB: loop body
LE: loop exit
PB: predicated region body
PF: predicated region fallthrough
CT: control target
= control target key end

     0   :  { %8 = vsyncpa [#allocation3], 0  ;;  %s746_s0 = inlined_call_operand.hbm [shape: f32[1,160], index: 0, kind: input, shape index: {}]   ;;  %s747_s1 = inlined_call_operand.hbm [shape: f32[160,640], index: 1, kind: input, shape index: {}]   ;;  %s748_s2 = inlined_call_operand.vmem [shape: f32[1,640], index: 2, kind: input, shape index: {}]   ;;  %s749_s3 = inlined_call_operand.hbm [shape: f32[1,640], index: 3, kind: output, shape index: {}]  }
   0x1   :  { %9 = vsyncpa [#allocation6], 0 }
   0x2   :  { %10 = vsyncpa [#allocation4], 0  ;;  %s652_s12 = smov [#allocation2]   ;;  %s653_s14 = smov [#allocation5]  }
   0x3   :  { %s17_s13 = sshll.u32 %s652_s12, 4  ;;  %s26_s15 = sshll.u32 %s653_s14, 4  ;;  %s18_s13 = int_to_ptr.vmem [resolvable:$true] %s17_s13  ;;  %s679_s15 = int_to_ptr.vmem [resolvable:$true] %s26_s15 }
   0x4   :  { %s580_s18 = scalar_lea.hbm %s746_s0, 32 }
   0x5   :  { %p581_p0 = scmp.ne.s32.totalorder %s746_s0, %s580_s18  ;;  %p584_p1 = scmp.lt.u32.totalorder %s580_s18, %s746_s0 }
   0x7   :  { %p586_p2 = pnand %p584_p1, %p581_p0 }
   0x9   :  { %589 = shalt.err (!%p586_p2)
}
   0xa   :  { %s590_s23 = scalar_lea.vmem %s18_s13, 32  ;;  %p595_p4 = scmp.lt.s32.totalorder %s18_s13, %s18_s13 }
   0xb   :  { %p591_p3 = scmp.ne.s32.totalorder %s18_s13, %s590_s23  ;;  %p596_p5 = scmp.lt.s32.totalorder %s590_s23, %s590_s23 }
   0xd   :  { %p597_p6 = por %p596_p5, %p595_p4 }
   0xf   :  { %p598_p7 = pnand %p597_p6, %p591_p3 }
  0x11   :  { %601 = shalt.err (!%p598_p7)
}
  0x12   :  { %20 = dma.hbm_to_vmem [thread:$0]  %s746_s0, 32, %s18_s13, [#allocation3]  }
  0x13   :  { %s602_s28 = scalar_lea.hbm %s747_s1, 12800 }
  0x14   :  { %p603_p8 = scmp.ne.s32.totalorder %s747_s1, %s602_s28  ;;  %p606_p9 = scmp.lt.u32.totalorder %s602_s28, %s747_s1 }
  0x16   :  { %p608_p10 = pnand %p606_p9, %p603_p8 }
  0x18   :  { %611 = shalt.err (!%p608_p10)
}
  0x19   :  { %s612_s6 = scalar_lea.vmem %s679_s15, 12800  ;;  %p617_p12 = scmp.lt.s32.totalorder %s679_s15, %s679_s15 }
  0x1a   :  { %p613_p11 = scmp.ne.s32.totalorder %s679_s15, %s612_s6  ;;  %p618_p13 = scmp.lt.s32.totalorder %s612_s6, %s612_s6 }
  0x1c   :  { %p619_p0 = por %p618_p13, %p617_p12 }
  0x1e   :  { %p620_p1 = pnand %p619_p0, %p613_p11 }
  0x20   :  { %623 = shalt.err (!%p620_p1)
}
  0x21   :  { %s654_s0 = smov 640   ;;  %s655_s7 = smov 40  }
  0x22   :  { %32 = dma.hbm_to_vmem [thread:$0]  %s747_s1, 12800, %s679_s15, [#allocation6], %s654_s0, %s654_s0, %s655_s7  }
  0x23   :  { %646 = dma.done.wait [#allocation3], 32  }
  0x24   :  { %647 = vsyncadd [#allocation3], 4294967264 }
  0x25   :  { %648 = dma.done.wait [#allocation6], 12800  }
  0x26   :  { %649 = vsyncadd [#allocation6], 4294954496  ;;  %v43_v0 = vld [vmem:[#allocation5 + $0x8] sm:$0xff]  ;;  %v48_v1 = vld [vmem:[#allocation5 + $0x30] sm:$0xff]  ;;  %v144_v62 = vlaneseq  ;;  %vm179_vm0 = vcmask 261120  }
  0x27   :  { %v45_v2 = vld [vmem:[#allocation5 + $0x18] sm:$0xff]  ;;  %v463_v3 = vpack.c.bf16 %v48_v1, %v43_v0  ;;  %v50_v4 = vld [vmem:[#allocation5 + $0x40] sm:$0xff]  ;;  %v47_v6 = vld [vmem:[#allocation5 + $0x28] sm:$0xff] }
  0x28   :  { %v42_v5 = vld [vmem:[#allocation5] sm:$0xff]  ;;  %v503_v7 = vpack.c.bf16 %v50_v4, %v45_v2  ;;  %v44_v9 = vld [vmem:[#allocation5 + $0x10] sm:$0xff]  ;;  %v49_v10 = vld [vmem:[#allocation5 + $0x38] sm:$0xff]  ;;  %vm441_vm1 = vcmp.lt.s32.totalorder %v144_v62, 640 }
  0x29   :  { %v465_v8 = vpack.c.bf16 %v47_v6, %v42_v5  ;;  %v53_v11 = vld [vmem:[#allocation5 + $0x58] sm:$0xff]  ;;  %464 = vmatprep.subr.bf16.mxu0 %v463_v3  ;;  %v505_v12 = vpack.c.bf16 %v49_v10, %v44_v9  ;;  %v58_v13 = vld [vmem:[#allocation5 + $0x80] sm:$0xff]  ;;  %v55_v14 = vld [vmem:[#allocation5 + $0x68] sm:$0xff] }
  0x2a   :  { %v60_v15 = vld [vmem:[#allocation5 + $0x90] sm:$0xff]  ;;  %504 = vmatprep.subr.bf16.mxu1 %v503_v7  ;;  %v467_v16 = vpack.c.bf16 %v58_v13, %v53_v11  ;;  %v57_v19 = vld [vmem:[#allocation5 + $0x78] sm:$0xff]  ;;  %v54_v20 = vld [vmem:[#allocation5 + $0x60] sm:$0xff]  ;;  %v711_v11 = vshrl.u32 %v144_v62, 7 }
  0x2b   :  { %466 = vmatpush1.bf16.msra.mxu0 %v465_v8  ;;  %v507_v17 = vpack.c.bf16 %v60_v15, %v55_v14  ;;  %v52_v18 = vld [vmem:[#allocation5 + $0x50] sm:$0xff]  ;;  %506 = vmatpush1.bf16.msra.mxu1 %v505_v12  ;;  %v59_v22 = vld [vmem:[#allocation5 + $0x88] sm:$0xff]  ;;  %v65_v27 = vld [vmem:[#allocation5 + $0xb8] sm:$0xff] }
  0x2c   :  { %v469_v21 = vpack.c.bf16 %v57_v19, %v52_v18  ;;  %v63_v23 = vld [vmem:[#allocation5 + $0xa8] sm:$0xff]  ;;  %v68_v24 = vld [vmem:[#allocation5 + $0xd0] sm:$0xff]  ;;  %468 = vmatprep.subr.bf16.mxu0 %v467_v16  ;;  %v509_v25 = vpack.c.bf16 %v59_v22, %v54_v20  ;;  %v70_v28 = vld [vmem:[#allocation5 + $0xe0] sm:$0xff] }
  0x2d   :  { %508 = vmatprep.subr.bf16.mxu1 %v507_v17  ;;  %v471_v26 = vpack.c.bf16 %v68_v24, %v63_v23  ;;  %v62_v29 = vld [vmem:[#allocation5 + $0xa0] sm:$0xff]  ;;  %v511_v30 = vpack.c.bf16 %v70_v28, %v65_v27  ;;  %v67_v31 = vld [vmem:[#allocation5 + $0xc8] sm:$0xff]  ;;  %v64_v32 = vld [vmem:[#allocation5 + $0xb0] sm:$0xff]  ;;  %v150_v24 = vsub.s32 1, %v711_v11 }
  0x2e   :  { %v69_v33 = vld [vmem:[#allocation5 + $0xd8] sm:$0xff]  ;;  %v473_v34 = vpack.c.bf16 %v67_v31, %v62_v29  ;;  %v78_v36 = vld [vmem:[#allocation5 + $0x120] sm:$0xff]  ;;  %v75_v37 = vld [vmem:[#allocation5 + $0x108] sm:$0xff] }
  0x2f   :  { %470 = vmatpush1.bf16.msra.mxu0 %v469_v21  ;;  %v73_v35 = vld [vmem:[#allocation5 + $0xf8] sm:$0xff]  ;;  %510 = vmatpush1.bf16.msra.mxu1 %v509_v25  ;;  %v513_v38 = vpack.c.bf16 %v69_v33, %v64_v32  ;;  %v80_v40 = vld [vmem:[#allocation5 + $0x130] sm:$0xff]  ;;  %v74_v44 = vld [vmem:[#allocation5 + $0x100] sm:$0xff] }
  0x30   :  { %472 = vmatprep.subr.bf16.mxu0 %v471_v26  ;;  %v475_v39 = vpack.c.bf16 %v78_v36, %v73_v35  ;;  %v72_v41 = vld [vmem:[#allocation5 + $0xf0] sm:$0xff]  ;;  %v77_v42 = vld [vmem:[#allocation5 + $0x118] sm:$0xff]  ;;  %512 = vmatprep.subr.bf16.mxu1 %v511_v30  ;;  %v515_v43 = vpack.c.bf16 %v80_v40, %v75_v37  ;;  %v79_v45 = vld [vmem:[#allocation5 + $0x128] sm:$0xff] }
  0x31   :  { %v83_v46 = vld [vmem:[#allocation5 + $0x148] sm:$0xff]  ;;  %v88_v47 = vld [vmem:[#allocation5 + $0x170] sm:$0xff]  ;;  %v85_v48 = vld [vmem:[#allocation5 + $0x158] sm:$0xff]  ;;  %v477_v50 = vpack.c.bf16 %v77_v42, %v72_v41  ;;  %v517_v51 = vpack.c.bf16 %v79_v45, %v74_v44 }
  0x32   :  { %v90_v49 = vld [vmem:[#allocation5 + $0x180] sm:$0xff]  ;;  %v479_v52 = vpack.c.bf16 %v88_v47, %v83_v46  ;;  %v87_v54 = vld [vmem:[#allocation5 + $0x168] sm:$0xff]  ;;  %v84_v55 = vld [vmem:[#allocation5 + $0x150] sm:$0xff] }
  0x33   :  { %474 = vmatpush1.bf16.msra.mxu0 %v473_v34  ;;  %514 = vmatpush1.bf16.msra.mxu1 %v513_v38  ;;  %v82_v53 = vld [vmem:[#allocation5 + $0x140] sm:$0xff]  ;;  %v519_v56 = vpack.c.bf16 %v90_v49, %v85_v48  ;;  %v89_v57 = vld [vmem:[#allocation5 + $0x178] sm:$0xff]  ;;  %v95_v60 = vld [vmem:[#allocation5 + $0x1a8] sm:$0xff] }
  0x34   :  { %476 = vmatprep.subr.bf16.mxu0 %v475_v39  ;;  %516 = vmatprep.subr.bf16.mxu1 %v515_v43  ;;  %v93_v58 = vld [vmem:[#allocation5 + $0x198] sm:$0xff]  ;;  %v98_v59 = vld [vmem:[#allocation5 + $0x1c0] sm:$0xff]  ;;  %v100_v61 = vld [vmem:[#allocation5 + $0x1d0] sm:$0xff]  ;;  %v481_v63 = vpack.c.bf16 %v87_v54, %v82_v53  ;;  %v521_v0 = vpack.c.bf16 %v89_v57, %v84_v55 }
  0x35   :  { %v483_v1 = vpack.c.bf16 %v98_v59, %v93_v58  ;;  %v92_v2 = vld [vmem:[#allocation5 + $0x190] sm:$0xff]  ;;  %v97_v3 = vld [vmem:[#allocation5 + $0x1b8] sm:$0xff]  ;;  %v94_v4 = vld [vmem:[#allocation5 + $0x1a0] sm:$0xff]  ;;  %v523_v5 = vpack.c.bf16 %v100_v61, %v95_v60  ;;  %v146_v59 = vsub.s32 0, %v711_v11 }
  0x36   :  { %v99_v6 = vld [vmem:[#allocation5 + $0x1c8] sm:$0xff]  ;;  %v108_v8 = vld [vmem:[#allocation5 + $0x210] sm:$0xff]  ;;  %v105_v9 = vld [vmem:[#allocation5 + $0x1f8] sm:$0xff]  ;;  %v485_v12 = vpack.c.bf16 %v97_v3, %v92_v2  ;;  %v656_v3 = vmov 0.0|0.0  }
  0x37   :  { %478 = vmatpush1.bf16.msra.mxu0 %v477_v50  ;;  %518 = vmatpush1.bf16.msra.mxu1 %v517_v51  ;;  %v103_v7 = vld [vmem:[#allocation5 + $0x1e8] sm:$0xff]  ;;  %v110_v10 = vld [vmem:[#allocation5 + $0x220] sm:$0xff]  ;;  %v525_v13 = vpack.c.bf16 %v99_v6, %v94_v4  ;;  %v104_v17 = vld [vmem:[#allocation5 + $0x1f0] sm:$0xff] }
  0x38   :  { %480 = vmatprep.subr.bf16.mxu0 %v479_v52  ;;  %520 = vmatprep.subr.bf16.mxu1 %v519_v56  ;;  %v487_v14 = vpack.c.bf16 %v108_v8, %v103_v7  ;;  %v102_v15 = vld [vmem:[#allocation5 + $0x1e0] sm:$0xff]  ;;  %v107_v16 = vld [vmem:[#allocation5 + $0x208] sm:$0xff]  ;;  %v527_v18 = vpack.c.bf16 %v110_v10, %v105_v9  ;;  %v109_v19 = vld [vmem:[#allocation5 + $0x218] sm:$0xff] }
  0x39   :  { %v113_v20 = vld [vmem:[#allocation5 + $0x238] sm:$0xff]  ;;  %v118_v21 = vld [vmem:[#allocation5 + $0x260] sm:$0xff]  ;;  %v115_v22 = vld [vmem:[#allocation5 + $0x248] sm:$0xff]  ;;  %v489_v25 = vpack.c.bf16 %v107_v16, %v102_v15  ;;  %v529_v27 = vpack.c.bf16 %v109_v19, %v104_v17 }
  0x3a   :  { %v120_v23 = vld [vmem:[#allocation5 + $0x270] sm:$0xff]  ;;  %v491_v28 = vpack.c.bf16 %v118_v21, %v113_v20  ;;  %v117_v29 = vld [vmem:[#allocation5 + $0x258] sm:$0xff]  ;;  %v114_v30 = vld [vmem:[#allocation5 + $0x240] sm:$0xff] }
  0x3b   :  { %482 = vmatpush1.bf16.msra.mxu0 %v481_v63  ;;  %522 = vmatpush1.bf16.msra.mxu1 %v521_v0  ;;  %v112_v26 = vld [vmem:[#allocation5 + $0x230] sm:$0xff]  ;;  %v119_v31 = vld [vmem:[#allocation5 + $0x268] sm:$0xff]  ;;  %v531_v32 = vpack.c.bf16 %v120_v23, %v115_v22  ;;  %v41_v35 = vld [vmem:[#allocation2] sm:$0x3] }
  0x3c   :  { %484 = vmatprep.subr.bf16.mxu0 %v483_v1  ;;  %524 = vmatprep.subr.bf16.mxu1 %v523_v5  ;;  %v123_v33 = vld [vmem:[#allocation5 + $0x288] sm:$0xff]  ;;  %v128_v34 = vld [vmem:[#allocation5 + $0x2b0] sm:$0xff]  ;;  %v125_v36 = vld [vmem:[#allocation5 + $0x298] sm:$0xff]  ;;  %v151_v38 = vrot.slane %v41_v35, %v150_v24  ;;  %v493_v39 = vpack.c.bf16 %v117_v29, %v112_v26  ;;  %v533_v40 = vpack.c.bf16 %v119_v31, %v114_v30 }
  0x3d   :  { %v130_v37 = vld [vmem:[#allocation5 + $0x2c0] sm:$0xff]  ;;  %v495_v41 = vpack.c.bf16 %v128_v34, %v123_v33  ;;  %v127_v43 = vld [vmem:[#allocation5 + $0x2a8] sm:$0xff]  ;;  %v124_v44 = vld [vmem:[#allocation5 + $0x290] sm:$0xff]  ;;  %v147_v1 = vrot.slane %v41_v35, %v146_v59  ;;  %v164_v34 = vsub.s32 2, %v711_v11  ;;  %v657_v35 = vmov 1966171168  }
  0x3e   :  { %v122_v42 = vld [vmem:[#allocation5 + $0x280] sm:$0xff]  ;;  %v535_v45 = vpack.c.bf16 %v130_v37, %v125_v36  ;;  %v129_v46 = vld [vmem:[#allocation5 + $0x2b8] sm:$0xff]  ;;  %460 = vmatprep.mubr.msk.f32.mxu0 %vm179_vm0, %v151_v38  ;;  %v135_v49 = vld [vmem:[#allocation5 + $0x2e8] sm:$0xff]  ;;  %461 = vmatprep.mubr.msk.f32.mxu1 %vm179_vm0, %v151_v38  ;;  %v402_v36 = vunpack.c.l.s4 %v657_v35  ;;  %v168_v37 = vsub.s32 3, %v711_v11 }
  0x3f   :  { %486 = vmatpush1.bf16.msra.mxu0 %v485_v12  ;;  %526 = vmatpush1.bf16.msra.mxu1 %v525_v13  ;;  %v133_v47 = vld [vmem:[#allocation5 + $0x2d8] sm:$0xff]  ;;  %v138_v48 = vld [vmem:[#allocation5 + $0x300] sm:$0xff]  ;;  %v140_v50 = vld [vmem:[#allocation5 + $0x310] sm:$0xff]  ;;  %v497_v51 = vpack.c.bf16 %v127_v43, %v122_v42  ;;  %v537_v52 = vpack.c.bf16 %v129_v46, %v124_v44 }
  0x40   :  { %488 = vmatprep.subr.bf16.mxu0 %v487_v14  ;;  %528 = vmatprep.subr.bf16.mxu1 %v527_v18  ;;  %v499_v53 = vpack.c.bf16 %v138_v48, %v133_v47  ;;  %v132_v54 = vld [vmem:[#allocation5 + $0x2d0] sm:$0xff]  ;;  %v137_v55 = vld [vmem:[#allocation5 + $0x2f8] sm:$0xff]  ;;  %v539_v56 = vpack.c.bf16 %v140_v50, %v135_v49  ;;  %v134_v57 = vld [vmem:[#allocation5 + $0x2e0] sm:$0xff] }
  0x41   :  { %v139_v58 = vld [vmem:[#allocation5 + $0x308] sm:$0xff]  ;;  %v501_v60 = vpack.c.bf16 %v137_v55, %v132_v54  ;;  %v46_v63 = vld [vmem:[#allocation5 + $0x20] sm:$0xff]  ;;  %v56_v4 = vld [vmem:[#allocation5 + $0x70] sm:$0xff] }
  0x42   :  { %v541_v61 = vpack.c.bf16 %v139_v58, %v134_v57  ;;  %v51_v0 = vld [vmem:[#allocation5 + $0x48] sm:$0xff]  ;;  %v61_v5 = vld [vmem:[#allocation5 + $0x98] sm:$0xff]  ;;  %v66_v7 = vld [vmem:[#allocation5 + $0xc0] sm:$0xff]  ;;  %v172_v57 = vsub.s32 4, %v711_v11 }
  0x43   :  { %490 = vmatpush1.bf16.msra.mxu0 %v489_v25  ;;  %530 = vmatpush1.bf16.msra.mxu1 %v529_v27  ;;  %v544_v2 = vpack.c.bf16 %v51_v0, %v46_v63  ;;  %v547_v6 = vpack.c.bf16 %v61_v5, %v56_v4  ;;  %v71_v8 = vld [vmem:[#allocation5 + $0xe8] sm:$0xff]  ;;  %v76_v10 = vld [vmem:[#allocation5 + $0x110] sm:$0xff]  ;;  %v81_v12 = vld [vmem:[#allocation5 + $0x138] sm:$0xff] }
  0x44   :  { %492 = vmatprep.subr.bf16.mxu0 %v491_v28  ;;  %532 = vmatprep.subr.bf16.mxu1 %v531_v32  ;;  %v550_v9 = vpack.c.bf16 %v71_v8, %v66_v7  ;;  %v553_v13 = vpack.c.bf16 %v81_v12, %v76_v10  ;;  %v86_v14 = vld [vmem:[#allocation5 + $0x160] sm:$0xff]  ;;  %v91_v15 = vld [vmem:[#allocation5 + $0x188] sm:$0xff]  ;;  %v96_v17 = vld [vmem:[#allocation5 + $0x1b0] sm:$0xff] }
  0x45   :  { %v556_v16 = vpack.c.bf16 %v91_v15, %v86_v14  ;;  %v101_v18 = vld [vmem:[#allocation5 + $0x1d8] sm:$0xff]  ;;  %v106_v20 = vld [vmem:[#allocation5 + $0x200] sm:$0xff]  ;;  %v111_v21 = vld [vmem:[#allocation5 + $0x228] sm:$0xff] }
  0x46   :  { %v559_v19 = vpack.c.bf16 %v101_v18, %v96_v17  ;;  %v562_v22 = vpack.c.bf16 %v111_v21, %v106_v20  ;;  %v116_v23 = vld [vmem:[#allocation5 + $0x250] sm:$0xff]  ;;  %v121_v25 = vld [vmem:[#allocation5 + $0x278] sm:$0xff]  ;;  %v126_v27 = vld [vmem:[#allocation5 + $0x2a0] sm:$0xff] }
  0x47   :  { %494 = vmatpush1.bf16.msra.mxu0 %v493_v39  ;;  %534 = vmatpush1.bf16.msra.mxu1 %v533_v40  ;;  %v565_v26 = vpack.c.bf16 %v121_v25, %v116_v23  ;;  %v131_v28 = vld [vmem:[#allocation5 + $0x2c8] sm:$0xff]  ;;  %v136_v30 = vld [vmem:[#allocation5 + $0x2f0] sm:$0xff]  ;;  %v141_v31 = vld [vmem:[#allocation5 + $0x318] sm:$0xff] }
  0x48   :  { %496 = vmatprep.subr.bf16.mxu0 %v495_v41  ;;  %536 = vmatprep.subr.bf16.mxu1 %v535_v45  ;;  %v568_v29 = vpack.c.bf16 %v131_v28, %v126_v27  ;;  %v571_v32 = vpack.c.bf16 %v141_v31, %v136_v30  ;;  %v142_v33 = vld [vmem:[%s748_s2] sm:$0x1f]  ;;  %v403_v41 = vunpack.c.0.s8 %v402_v36  ;;  %s658_s2 = smov [#allocation7]  }
  0x49   :  { %v165_v39 = vrot.slane %v142_v33, %v164_v34  ;;  %v161_v40 = vrot.slane %v142_v33, %v150_v24  ;;  %v169_v42 = vrot.slane %v142_v33, %v168_v37  ;;  %v173_v24 = vrot.slane %v142_v33, %v172_v57  ;;  %s450_s11 = sshll.u32 %s658_s2, 4  ;;  %s451_s11 = int_to_ptr.vmem [resolvable:$true] %s450_s11 }
  0x4a   :  { %v406_v49 = vsub.s32 %v403_v41, %v711_v11  ;;  %s624_s12 = scalar_lea.vmem %s451_s11, 80  ;;  %s628_s13 = scalar_lea.vmem %s451_s11, 96 }
  0x4b   :  { %498 = vmatpush1.bf16.msra.mxu0 %v497_v51  ;;  %538 = vmatpush1.bf16.msra.mxu1 %v537_v52  ;;  %p625_p2 = scmp.ne.s32.totalorder %s451_s11, %s624_s12  ;;  %p629_p3 = scmp.lt.s32.totalorder %s451_s11, %s451_s11 }
  0x4c   :  { %500 = vmatprep.subr.bf16.mxu0 %v499_v53  ;;  %540 = vmatprep.subr.bf16.mxu1 %v539_v56  ;;  %p630_p4 = scmp.lt.s32.totalorder %s628_s13, %s624_s12 }
  0x4e   :  { %p631_p5 = por %p630_p4, %p629_p3 }
  0x4f   :  { %502 = vmatpush1.bf16.msra.mxu0 %v501_v60  ;;  %542 = vmatpush1.bf16.msra.mxu1 %v541_v61 }
  0x50   :  { %543 = vmatprep.subr.bf16.mxu0 %v656_v3  ;;  %p632_p6 = pnand %p631_p5, %p625_p2 }
  0x52   :  { %247 = vmatmul.mubr.f32.vlgmr.msra.gmra.mrb[0].mxu0 %v147_v1  ;;  %318 = vmatmul.mubr.f32.vlgmr.msra.gmra.mrb[0].mxu1 %v147_v1 }
  0x53   :  { %545 = vmatpush1.bf16.msra.mxu0 %v544_v2  ;;  %462 = vmatprep.mubr.msk.f32.mxu0 %vm179_vm0, %v151_v38  ;;  %v157_v38 = vrot.slane %v142_v33, %v146_v59 }
  0x54   :  { %546 = vmatprep.subr.bf16.mxu0 %v656_v3 }
  0x57   :  { %548 = vmatpush1.bf16.msra.mxu0 %v547_v6 }
  0x58   :  { %549 = vmatprep.subr.bf16.mxu0 %v656_v3 }
  0x5b   :  { %551 = vmatpush1.bf16.msra.mxu0 %v550_v9 }
  0x5c   :  { %552 = vmatprep.subr.bf16.mxu0 %v656_v3 }
  0x5f   :  { %554 = vmatpush1.bf16.msra.mxu0 %v553_v13 }
  0x60   :  { %555 = vmatprep.subr.bf16.mxu0 %v656_v3 }
  0x63   :  { %557 = vmatpush1.bf16.msra.mxu0 %v556_v16 }
  0x64   :  { %558 = vmatprep.subr.bf16.mxu0 %v656_v3 }
  0x67   :  { %560 = vmatpush1.bf16.msra.mxu0 %v559_v19 }
  0x68   :  { %561 = vmatprep.subr.bf16.mxu0 %v656_v3 }
  0x6b   :  { %563 = vmatpush1.bf16.msra.mxu0 %v562_v22 }
  0x6c   :  { %564 = vmatprep.subr.bf16.mxu0 %v656_v3 }
  0x6f   :  { %566 = vmatpush1.bf16.msra.mxu0 %v565_v26 }
  0x70   :  { %567 = vmatprep.subr.bf16.mxu0 %v656_v3 }
  0x73   :  { %569 = vmatpush1.bf16.msra.mxu0 %v568_v29 }
  0x74   :  { %570 = vmatprep.subr.bf16.mxu0 %v656_v3 }
  0x77   :  { %572 = vmatpush1.bf16.msra.mxu0 %v571_v32 }
  0x7a   :  { %389 = vmatmul.mubr.f32.vlgmr.msra.gmra.mrb[2].mxu0 %v147_v1 }
 0x125   :  { %v248_v43 = vpop.f32.mrb[0].mxu0  ;;  %v319_v45 = vpop.f32.mrb[0].mxu1 }
 0x126   :  { %v249_v44 = vadd.f32 %v248_v43, %v157_v38  ;;  %v250_v46 = vpop.f32.mrb[1].mxu0  ;;  %v320_v47 = vadd.f32 %v319_v45, %v165_v39  ;;  %v321_v50 = vpop.f32.mrb[1].mxu1 }
 0x127   :  { %v251_v48 = vadd.f32 %v250_v46, %v161_v40  ;;  %v322_v51 = vadd.f32 %v321_v50, %v169_v42 }
 0x129   :  { %v399_v52 = vcombine.low %v249_v44, %v251_v48  ;;  %v400_v53 = vcombine.low %v320_v47, %v322_v51 }
 0x12b   :  { %v407_v54 = vrot.slane %v399_v52, %v406_v49  ;;  %v414_v55 = vrot.slane %v400_v53, %v406_v49 }
 0x12d   :  { %v422_v56 = vcombine.low %v407_v54, %v414_v55 }
 0x12f   :  { %v429_v0 = vrot.slane %v422_v56, %v406_v49 }
 0x14d   :  { %v390_v58 = vpop.f32.mrb[2].mxu0 }
 0x14e   :  { %v391_v59 = vadd.f32 %v390_v58, %v173_v24  ;;  %v392_v60 = vpop.f32.mrb[3].mxu0 }
 0x150   :  { %v421_v61 = vrot.slane %v391_v59, %v406_v49 }
 0x152   :  { %v436_v63 = vrot.slane %v421_v61, %v406_v49 }
 0x154   :  { %v437_v1 = vcombine.low %v429_v0, %v436_v63 }
 0x156   :  { %443 = vst.msk [vmem:[#allocation7] sm:$0x1f] %vm441_vm1, %v437_v1 }
 0x157   :  { %635 = shalt.err (!%p632_p6)
}
 0x158   :  { %s636_s16 = scalar_lea.hbm %s749_s3, 80 }
 0x159   :  { %p637_p7 = scmp.ne.s32.totalorder %s749_s3, %s636_s16  ;;  %p640_p8 = scmp.lt.u32.totalorder %s636_s16, %s749_s3 }
 0x15b   :  { %p642_p9 = pnand %p640_p8, %p637_p7 }
 0x15d   :  { %645 = shalt.err (!%p642_p9)
}
 0x15e   :  { %453 = dma.vmem_to_hbm [thread:$0]  %s451_s11, 80, %s749_s3, [#allocation4]  }
 0x15f   :  { %650 = dma.done.wait [#allocation4], 80  }
 0x160   :  { %651 = vsyncadd [#allocation4], 4294967216 }
 0x161   :  { %457 = vsyncpa [#allocation3], 1 }
 0x162   :  { %458 = vsyncpa [#allocation6], 1 }
 0x163   :  { %459 = vsyncpa [#allocation4], 1 }

</bundles_post_ra>
